<compile_context>
chip_gen: v5e
topology: v5e:2x2
jax: 0.10.0
libtpu: 0.0.40
codegen_flags: <defaults>
</compile_context>

<pallas_src>
import numpy as np
import jax
import jax.numpy as jnp
from jax import lax
from jax.experimental import pallas as pl
from jax.experimental.pallas import tpu as pltpu


# -----------------------------------------------------------------------------
# Model configuration (small, consistent with the module's __init__ signature)
# -----------------------------------------------------------------------------
INPUT_SIZE = 16                 # per-fighter feature size
INPUT_SIZE_F = 8                # fight-level feature size (X3)
FIGHTER_SHAPE = [32, 24]        # fighter_network_shape (hidden layers of FighterNet)
FUSION_SHAPE = [32, 16, 1]      # network_shape (hidden layers of SymmetricFightNet)

BATCH = 16

# Padded widths inside the kernel (everything lives on <=32 lanes).
W = 32                          # common padded lane width for weights / activations
X3AUG_W = 16                    # padded width of [X3 (8), odds1-odds2 (1), zeros]

# Parameter-slab row offsets.  Every block starts on an 8-row boundary so all
# in-kernel sublane slices are aligned.
FW0_R = 0      # fighter fc0 weight   (16, 32)
FB0_R = 16     # fighter fc0 bias     (1, 32)
FW1_R = 24     # fighter fc1 weight   (32, 24) -> cols 24:32 zero
FB1_R = 56     # fighter fc1 bias     (1, 24)  -> cols 24:32 zero
W0SF_R = 64    # fusion fc0 symmetric weight (24, 32) -> rows 24:32 zero
W0AUX_R = 96   # fusion fc0 aux weight [w0_x3; w0_sym_odds] (9, 32) -> rows 9:16 zero
B0_R = 112     # fusion fc0 bias      (1, 32)
W1_R = 120     # fusion fc1 weight    (32, 16) -> cols 16:32 zero
B1_R = 152     # fusion fc1 bias      (1, 16)  -> cols 16:32 zero
W2_R = 160     # fusion fc2 weight as row vector (1, 16) -> cols 16:32 zero
B2_R = 161     # fusion fc2 bias scalar at col 0
SLAB_ROWS = 168


# -----------------------------------------------------------------------------
# Pallas kernel: full SymmetricFightNet forward, single invocation
# -----------------------------------------------------------------------------
def symmetric_fight_kernel(x12_ref, x3aug_ref, p_ref, out_ref):
    B = out_ref.shape[1]

    def mm(x, w):
        # bf16 operands -> single MXU pass; accumulate / return in f32.
        return jnp.dot(x.astype(jnp.bfloat16), w.astype(jnp.bfloat16),
                       preferred_element_type=jnp.float32)

    # ---- shared FighterNet run ONCE on the stacked [X1; X2] batch (2B, 16) ----
    h = jnp.maximum(mm(x12_ref[...], p_ref[FW0_R:FW0_R + INPUT_SIZE, :])
                    + p_ref[FB0_R:FB0_R + 1, :], 0.0)               # (2B, 32)
    h = jnp.maximum(mm(h, p_ref[FW1_R:FW1_R + W, :])
                    + p_ref[FB1_R:FB1_R + 1, :], 0.0)               # (2B, 32), cols 24:32 = 0

    # symmetric difference of the two fighter embeddings (sublane-aligned split)
    d = h[0:B, :] - h[B:2 * B, :]                                   # (B, 32), cols 24:32 = 0

    # ---- fusion MLP (the concat [o1-o2, o2-o1, X3] is folded into the weights) ----
    pre0 = (mm(d, p_ref[W0SF_R:W0SF_R + W, :])
            + mm(x3aug_ref[...], p_ref[W0AUX_R:W0AUX_R + X3AUG_W, :])
            + p_ref[B0_R:B0_R + 1, :])                              # (B, 32)
    h0 = jnp.maximum(pre0, 0.0)
    h1 = jnp.maximum(mm(h0, p_ref[W1_R:W1_R + W, :])
                     + p_ref[B1_R:B1_R + 1, :], 0.0)                # (B, 32), cols 16:32 = 0

    # final 1-wide layer, emitted lane-dense as (1, B):  logits[0, b] = <w2, h1[b]>
    w2_row = p_ref[W2_R:W2_R + 1, :]                                # (1, 32)
    logits = lax.dot_general(w2_row, h1,
                             dimension_numbers=(((1,), (1,)), ((), ())),
                             preferred_element_type=jnp.float32)    # (1, B)
    b2 = p_ref[B2_R:B2_R + 1, 0:1]                                  # (1, 1)
    out_ref[...] = jax.nn.sigmoid(logits + b2)


# -----------------------------------------------------------------------------
# One-time parameter packing into a single (168, 32) f32 slab
# -----------------------------------------------------------------------------
def pack_params(params):
    (fw0, fb0, fw1, fb1, w0, b0, w1, b1, w2, b2) = params
    H_F = FIGHTER_SHAPE[-1]                                # 24

    # Fold the symmetric concat into w0:
    #   x @ w0 = (o1-o2) @ (w0[0:25]-w0[25:50]) + X3 @ w0[50:58]
    w0_sym = w0[0:H_F + 1] - w0[H_F + 1:2 * (H_F + 1)]     # (25, 32)
    w0_sym_f = w0_sym[0:H_F]                               # (24, 32) pairs with f(X1)-f(X2)
    w0_sym_o = w0_sym[H_F:H_F + 1]                         # (1, 32)  pairs with odds1-odds2
    w0_x3 = w0[2 * (H_F + 1):]                             # (8, 32)  pairs with X3
    w0_aux = jnp.concatenate([w0_x3, w0_sym_o], axis=0)    # (9, 32)  matches X3aug layout

    slab = jnp.zeros((SLAB_ROWS, W), jnp.float32)

    def put(s, r0, a):
        return s.at[r0:r0 + a.shape[0], 0:a.shape[1]].set(a)

    slab = put(slab, FW0_R, fw0)
    slab = put(slab, FB0_R, fb0)
    slab = put(slab, FW1_R, fw1)
    slab = put(slab, FB1_R, fb1)
    slab = put(slab, W0SF_R, w0_sym_f)
    slab = put(slab, W0AUX_R, w0_aux)
    slab = put(slab, B0_R, b0)
    slab = put(slab, W1_R, w1)
    slab = put(slab, B1_R, b1)
    slab = put(slab, W2_R, w2.T)       # store fc2 weight as a (1, 16) row vector
    slab = put(slab, B2_R, b2)         # scalar bias at (B2_R, 0)
    return slab


# -----------------------------------------------------------------------------
# Wrapper: pack inputs, call the kernel once, reshape the lane-dense output
# -----------------------------------------------------------------------------
@jax.jit
def symmetric_fight_net(X1, X2, X3, odds1, odds2, param_slab):
    B = X1.shape[0]
    assert B % 8 == 0, "batch must be a multiple of 8 for aligned sublane splits"

    x12 = jnp.concatenate([X1, X2], axis=0)                        # (2B, 16)
    x3aug = jnp.zeros((B, X3AUG_W), jnp.float32)
    x3aug = x3aug.at[:, 0:INPUT_SIZE_F].set(X3)
    x3aug = x3aug.at[:, INPUT_SIZE_F:INPUT_SIZE_F + 1].set(odds1 - odds2)

    out_lane = pl.pallas_call(
        symmetric_fight_kernel,
        out_shape=jax.ShapeDtypeStruct((1, B), jnp.float32),
        in_specs=[
            pl.BlockSpec(memory_space=pltpu.MemorySpace.VMEM),     # x12
            pl.BlockSpec(memory_space=pltpu.MemorySpace.VMEM),     # x3aug
            pl.BlockSpec(memory_space=pltpu.MemorySpace.VMEM),     # param slab
        ],
        out_specs=pl.BlockSpec(memory_space=pltpu.MemorySpace.VMEM),
    )(x12, x3aug, param_slab)

    return out_lane.reshape(B, 1)


# -----------------------------------------------------------------------------
# Deterministic parameter init + pure-JAX (f32) reference
# -----------------------------------------------------------------------------
def init_params(key):
    fighter_dims = [INPUT_SIZE] + FIGHTER_SHAPE                       # [16, 32, 24]
    fused_in = FIGHTER_SHAPE[-1] * 2 + 2 + INPUT_SIZE_F               # 24*2 + 2 + 8 = 58
    fusion_dims = [fused_in] + FUSION_SHAPE                           # [58, 32, 16, 1]

    params = []
    dims = list(zip(fighter_dims[:-1], fighter_dims[1:])) + \
           list(zip(fusion_dims[:-1], fusion_dims[1:]))
    keys = jax.random.split(key, len(dims) * 2)
    for idx, (din, dout) in enumerate(dims):
        bound = 1.0 / np.sqrt(din)
        w = jax.random.uniform(keys[2 * idx], (din, dout), jnp.float32, -bound, bound)
        b = jax.random.uniform(keys[2 * idx + 1], (1, dout), jnp.float32, -bound, bound)
        params.append(w)
        params.append(b)
    return tuple(params)


def reference_forward(X1, X2, X3, odds1, odds2, params):
    (fw0, fb0, fw1, fb1, w0, b0, w1, b1, w2, b2) = params

    def fighter(x):
        h = jnp.maximum(x @ fw0 + fb0, 0.0)
        h = jnp.maximum(h @ fw1 + fb1, 0.0)
        return h

    o1 = jnp.concatenate([fighter(X1), odds1], axis=1)
    o2 = jnp.concatenate([fighter(X2), odds2], axis=1)
    x = jnp.concatenate([o1 - o2, o2 - o1, X3], axis=1)
    x = jnp.maximum(x @ w0 + b0, 0.0)
    x = jnp.maximum(x @ w1 + b1, 0.0)
    x = x @ w2 + b2
    return jax.nn.sigmoid(x)


# -----------------------------------------------------------------------------
if __name__ == "__main__":
    key = jax.random.PRNGKey(0)
    k_params, k1, k2, k3, k4, k5 = jax.random.split(key, 6)

    params = init_params(k_params)
    param_slab = pack_params(params)          # one-time packing into a single buffer

    X1 = jax.random.normal(k1, (BATCH, INPUT_SIZE), jnp.float32)
    X2 = jax.random.normal(k2, (BATCH, INPUT_SIZE), jnp.float32)
    X3 = jax.random.normal(k3, (BATCH, INPUT_SIZE_F), jnp.float32)
    odds1 = jax.random.uniform(k4, (BATCH, 1), jnp.float32, 1.0, 3.0)
    odds2 = jax.random.uniform(k5, (BATCH, 1), jnp.float32, 1.0, 3.0)

    out = symmetric_fight_net(X1, X2, X3, odds1, odds2, param_slab)
    out = jax.block_until_ready(out)

    ref = jax.block_until_ready(reference_forward(X1, X2, X3, odds1, odds2, params))

    assert out.shape == (BATCH, 1)
    assert bool(jnp.all(jnp.isfinite(out)))
    assert np.allclose(np.asarray(out), np.asarray(ref), atol=2e-2, rtol=2e-2)

    print("KERNEL_OK")
</pallas_src>

<mosaic_0001>
module attributes {stable_mosaic.version = 11 : i64} {
  func.func @symmetric_fight_kernel(%arg0: memref<32x16xf32, #tpu.memory_space<vmem>>, %arg1: memref<16x16xf32, #tpu.memory_space<vmem>>, %arg2: memref<168x32xf32, #tpu.memory_space<vmem>>, %arg3: memref<1x16xf32, #tpu.memory_space<vmem>>) attributes {dimension_semantics = [], scalar_prefetch = 0 : i64, scratch_operands = 0 : i64, tpu.core_type = #tpu.core_type<tc>} {
    %c0 = arith.constant 0 : index
    %c0_0 = arith.constant 0 : index
    %0 = vector.load %arg0[%c0, %c0_0] : memref<32x16xf32, #tpu.memory_space<vmem>>, vector<32x16xf32>
    %c0_1 = arith.constant 0 : index
    %c0_2 = arith.constant 0 : index
    %1 = vector.load %arg2[%c0_1, %c0_2] : memref<168x32xf32, #tpu.memory_space<vmem>>, vector<16x32xf32>
    %2 = arith.truncf %0 : vector<32x16xf32> to vector<32x16xbf16>
    %3 = arith.truncf %1 : vector<16x32xf32> to vector<16x32xbf16>
    %cst = arith.constant dense<0.000000e+00> : vector<32x32xf32>
    %4 = tpu.matmul %2, %3, %cst {dimension_numbers = #tpu.dot_dimension_numbers<[1], [0], [0], [1], [0, 0, 1, 1], [], []>} : vector<32x16xbf16>, vector<16x32xbf16>, vector<32x32xf32> -> vector<32x32xf32>
    %c16 = arith.constant 16 : index
    %c0_3 = arith.constant 0 : index
    %5 = vector.load %arg2[%c16, %c0_3] : memref<168x32xf32, #tpu.memory_space<vmem>>, vector<1x32xf32>
    %6 = vector.broadcast %5 : vector<1x32xf32> to vector<32x32xf32>
    %7 = arith.addf %4, %6 : vector<32x32xf32>
    %cst_4 = arith.constant 0.000000e+00 : f32
    %8 = vector.broadcast %cst_4 : f32 to vector<32x32xf32>
    %9 = arith.maximumf %7, %8 : vector<32x32xf32>
    %c24 = arith.constant 24 : index
    %c0_5 = arith.constant 0 : index
    %10 = vector.load %arg2[%c24, %c0_5] : memref<168x32xf32, #tpu.memory_space<vmem>>, vector<32x32xf32>
    %11 = arith.truncf %9 : vector<32x32xf32> to vector<32x32xbf16>
    %12 = arith.truncf %10 : vector<32x32xf32> to vector<32x32xbf16>
    %cst_6 = arith.constant dense<0.000000e+00> : vector<32x32xf32>
    %13 = tpu.matmul %11, %12, %cst_6 {dimension_numbers = #tpu.dot_dimension_numbers<[1], [0], [0], [1], [0, 0, 1, 1], [], []>} : vector<32x32xbf16>, vector<32x32xbf16>, vector<32x32xf32> -> vector<32x32xf32>
    %c56 = arith.constant 56 : index
    %c0_7 = arith.constant 0 : index
    %14 = vector.load %arg2[%c56, %c0_7] : memref<168x32xf32, #tpu.memory_space<vmem>>, vector<1x32xf32>
    %15 = vector.broadcast %14 : vector<1x32xf32> to vector<32x32xf32>
    %16 = arith.addf %13, %15 : vector<32x32xf32>
    %cst_8 = arith.constant 0.000000e+00 : f32
    %17 = vector.broadcast %cst_8 : f32 to vector<32x32xf32>
    %18 = arith.maximumf %16, %17 : vector<32x32xf32>
    %19 = vector.extract_strided_slice %18 {offsets = [0, 0], sizes = [16, 32], strides = [1, 1]} : vector<32x32xf32> to vector<16x32xf32>
    %20 = vector.extract_strided_slice %18 {offsets = [16, 0], sizes = [16, 32], strides = [1, 1]} : vector<32x32xf32> to vector<16x32xf32>
    %21 = arith.subf %19, %20 : vector<16x32xf32>
    %c64 = arith.constant 64 : index
    %c0_9 = arith.constant 0 : index
    %22 = vector.load %arg2[%c64, %c0_9] : memref<168x32xf32, #tpu.memory_space<vmem>>, vector<32x32xf32>
    %23 = arith.truncf %21 : vector<16x32xf32> to vector<16x32xbf16>
    %24 = arith.truncf %22 : vector<32x32xf32> to vector<32x32xbf16>
    %cst_10 = arith.constant dense<0.000000e+00> : vector<16x32xf32>
    %25 = tpu.matmul %23, %24, %cst_10 {dimension_numbers = #tpu.dot_dimension_numbers<[1], [0], [0], [1], [0, 0, 1, 1], [], []>} : vector<16x32xbf16>, vector<32x32xbf16>, vector<16x32xf32> -> vector<16x32xf32>
    %c0_11 = arith.constant 0 : index
    %c0_12 = arith.constant 0 : index
    %26 = vector.load %arg1[%c0_11, %c0_12] : memref<16x16xf32, #tpu.memory_space<vmem>>, vector<16x16xf32>
    %c96 = arith.constant 96 : index
    %c0_13 = arith.constant 0 : index
    %27 = vector.load %arg2[%c96, %c0_13] : memref<168x32xf32, #tpu.memory_space<vmem>>, vector<16x32xf32>
    %28 = arith.truncf %26 : vector<16x16xf32> to vector<16x16xbf16>
    %29 = arith.truncf %27 : vector<16x32xf32> to vector<16x32xbf16>
    %cst_14 = arith.constant dense<0.000000e+00> : vector<16x32xf32>
    %30 = tpu.matmul %28, %29, %cst_14 {dimension_numbers = #tpu.dot_dimension_numbers<[1], [0], [0], [1], [0, 0, 1, 1], [], []>} : vector<16x16xbf16>, vector<16x32xbf16>, vector<16x32xf32> -> vector<16x32xf32>
    %31 = arith.addf %25, %30 : vector<16x32xf32>
    %c112 = arith.constant 112 : index
    %c0_15 = arith.constant 0 : index
    %32 = vector.load %arg2[%c112, %c0_15] : memref<168x32xf32, #tpu.memory_space<vmem>>, vector<1x32xf32>
    %33 = vector.broadcast %32 : vector<1x32xf32> to vector<16x32xf32>
    %34 = arith.addf %31, %33 : vector<16x32xf32>
    %cst_16 = arith.constant 0.000000e+00 : f32
    %35 = vector.broadcast %cst_16 : f32 to vector<16x32xf32>
    %36 = arith.maximumf %34, %35 : vector<16x32xf32>
    %c120 = arith.constant 120 : index
    %c0_17 = arith.constant 0 : index
    %37 = vector.load %arg2[%c120, %c0_17] : memref<168x32xf32, #tpu.memory_space<vmem>>, vector<32x32xf32>
    %38 = arith.truncf %36 : vector<16x32xf32> to vector<16x32xbf16>
    %39 = arith.truncf %37 : vector<32x32xf32> to vector<32x32xbf16>
    %cst_18 = arith.constant dense<0.000000e+00> : vector<16x32xf32>
    %40 = tpu.matmul %38, %39, %cst_18 {dimension_numbers = #tpu.dot_dimension_numbers<[1], [0], [0], [1], [0, 0, 1, 1], [], []>} : vector<16x32xbf16>, vector<32x32xbf16>, vector<16x32xf32> -> vector<16x32xf32>
    %c152 = arith.constant 152 : index
    %c0_19 = arith.constant 0 : index
    %41 = vector.load %arg2[%c152, %c0_19] : memref<168x32xf32, #tpu.memory_space<vmem>>, vector<1x32xf32>
    %42 = vector.broadcast %41 : vector<1x32xf32> to vector<16x32xf32>
    %43 = arith.addf %40, %42 : vector<16x32xf32>
    %cst_20 = arith.constant 0.000000e+00 : f32
    %44 = vector.broadcast %cst_20 : f32 to vector<16x32xf32>
    %45 = arith.maximumf %43, %44 : vector<16x32xf32>
    %c160 = arith.constant 160 : index
    %c0_21 = arith.constant 0 : index
    %46 = vector.load %arg2[%c160, %c0_21] : memref<168x32xf32, #tpu.memory_space<vmem>>, vector<1x32xf32>
    %cst_22 = arith.constant dense<0.000000e+00> : vector<1x16xf32>
    %47 = tpu.matmul %46, %45, %cst_22 {dimension_numbers = #tpu.dot_dimension_numbers<[1], [1], [0], [0], [0, 0, 1, 0], [], []>} : vector<1x32xf32>, vector<16x32xf32>, vector<1x16xf32> -> vector<1x16xf32>
    %c161 = arith.constant 161 : index
    %c0_23 = arith.constant 0 : index
    %48 = vector.load %arg2[%c161, %c0_23] : memref<168x32xf32, #tpu.memory_space<vmem>>, vector<1x1xf32>
    %49 = vector.broadcast %48 : vector<1x1xf32> to vector<1x16xf32>
    %50 = arith.addf %47, %49 : vector<1x16xf32>
    %51 = arith.negf %50 : vector<1x16xf32>
    %52 = math.exp %51 : vector<1x16xf32>
    %cst_24 = arith.constant 1.000000e+00 : f32
    %53 = vector.broadcast %cst_24 : f32 to vector<1x16xf32>
    %54 = arith.addf %53, %52 : vector<1x16xf32>
    %55 = arith.divf %53, %54 : vector<1x16xf32>
    %c0_25 = arith.constant 0 : index
    %c0_26 = arith.constant 0 : index
    %56 = vector.load %arg3[%c0_25, %c0_26] : memref<1x16xf32, #tpu.memory_space<vmem>>, vector<1x16xf32>
    tpu.vector_store %arg3[%c0_25, %c0_26], %55 {strides = array<i32>} : memref<1x16xf32, #tpu.memory_space<vmem>>, vector<1x16xf32>,
    return
  }
}

</mosaic_0001>

<bundles_post_ra>
// kernel: symmetric_fight_net.1
= control target key start
LH: loop header
LB: loop body
LE: loop exit
PB: predicated region body
PF: predicated region fallthrough
CT: control target
= control target key end

     0   :  { %vm27_vm0 = vcmask 130048   ;;  %s420_s0 = inlined_call_operand.vmem [shape: f32[32,16], index: 0, kind: input, shape index: {}]   ;;  %s421_s1 = inlined_call_operand.vmem [shape: f32[16,16], index: 1, kind: input, shape index: {}]   ;;  %s422_s2 = inlined_call_operand.vmem [shape: f32[168,32], index: 2, kind: input, shape index: {}]   ;;  %s423_s3 = inlined_call_operand.hbm [shape: f32[1,16], index: 3, kind: output, shape index: {}]  }
   0x1   :  { %v20_v0 = vld [vmem:[%s422_s2] sm:$0xff]  ;;  %v21_v1 = vld [vmem:[%s422_s2 + $0x8] sm:$0xff] }
   0x2   :  { %v16_v2 = vld [vmem:[%s420_s0] sm:$0xff]  ;;  %v24_v3 = vpack.c.bf16 %v21_v1, %v20_v0  ;;  %v17_v4 = vld [vmem:[%s420_s0 + $0x8] sm:$0xff] }
   0x3   :  { %v22_v5 = vpack.c.bf16 %v17_v4, %v16_v2 }
   0x4   :  { %41 = vmatpush.bf16.msra.mxu0 %v24_v3 }
   0x5   :  { %8 = vsyncpa [#allocation3], 0  ;;  %v18_v6 = vld [vmem:[%s420_s0 + $0x10] sm:$0xff]  ;;  %v19_v7 = vld [vmem:[%s420_s0 + $0x18] sm:$0xff]  ;;  %vm67_vm1 = vcmask 261120   ;;  %s302_s11 = smov [#allocation2]  }
   0x6   :  { %v23_v8 = vpack.c.bf16 %v19_v7, %v18_v6  ;;  %v59_v9 = vld [vmem:[%s422_s2 + $0x28] sm:$0xff]  ;;  %v60_v10 = vld [vmem:[%s422_s2 + $0x30] sm:$0xff]  ;;  %v57_v12 = vld [vmem:[%s422_s2 + $0x18] sm:$0xff]  ;;  %s242_s12 = sshll.u32 %s302_s11, 4  ;;  %s244_s14 = sshll.u32 %s423_s3, 4  ;;  %vm235_vm5 = vcmask 122880   ;;  %s243_s12 = int_to_ptr.vmem [resolvable:$true] %s242_s12  ;;  %s245_s14 = int_to_ptr.hbm [resolvable:$true] %s244_s14 }
   0x7   :  { %253 = vmatmul.msk.bf16.vlgmr.msra.gmra.mxu0 %vm27_vm0, %v22_v5  ;;  %v64_v11 = vpack.c.bf16 %v60_v10, %v59_v9  ;;  %v58_v13 = vld [vmem:[%s422_s2 + $0x20] sm:$0xff]  ;;  %v267_v16 = vld [vmem:[%s422_s2 + $0x10] ss:$0 sm:$0xff]  ;;  %v109_v31 = vld [vmem:[%s422_s2 + $0x68] sm:$0xff] }
   0x8   :  { %v63_v14 = vpack.c.bf16 %v58_v13, %v57_v12  ;;  %v108_v30 = vld [vmem:[%s422_s2 + $0x60] sm:$0xff]  ;;  %v107_v34 = vld [vmem:[%s421_s1 + $0x8] sm:$0xff]  ;;  %v101_v36 = vld [vmem:[%s422_s2 + $0x50] sm:$0xff]  ;;  %v301_v13 = vmov 0  }
   0x9   :  { %80 = vmatpush.bf16.msra.mxu1 %v64_v11  ;;  %v111_v32 = vpack.c.bf16 %v109_v31, %v108_v30  ;;  %v106_v33 = vld [vmem:[%s421_s1] sm:$0xff]  ;;  %v102_v37 = vld [vmem:[%s422_s2 + $0x58] sm:$0xff]  ;;  %v100_v40 = vld [vmem:[%s422_s2 + $0x48] sm:$0xff]  ;;  %266 = vset.pattern.permute.xlu0 %v301_v13 }
   0xa   :  { %v110_v35 = vpack.c.bf16 %v107_v34, %v106_v33  ;;  %v105_v38 = vpack.c.bf16 %v102_v37, %v101_v36  ;;  %v99_v39 = vld [vmem:[%s422_s2 + $0x40] sm:$0xff]  ;;  %v268_v45 = vld [vmem:[%s422_s2 + $0x38] ss:$0 sm:$0xff]  ;;  %v154_v58 = vld [vmem:[%s422_s2 + $0x88] sm:$0xff] }
   0xb   :  { %122 = vmatpush.bf16.msra.mxu2 %v111_v32  ;;  %v104_v41 = vpack.c.bf16 %v100_v40, %v99_v39  ;;  %v155_v59 = vld [vmem:[%s422_s2 + $0x90] sm:$0xff]  ;;  %v152_v61 = vld [vmem:[%s422_s2 + $0x78] sm:$0xff]  ;;  %v153_v62 = vld [vmem:[%s422_s2 + $0x80] sm:$0xff] }
   0xc   :  { %138 = vmatpush.bf16.msra.mxu3 %v105_v38  ;;  %v158_v60 = vpack.c.bf16 %v155_v59, %v154_v58  ;;  %v157_v63 = vpack.c.bf16 %v153_v62, %v152_v61  ;;  %v269_v3 = vld [vmem:[%s422_s2 + $0x70] ss:$0 sm:$0xff]  ;;  %v181_v12 = vld [vmem:[%s422_s2 + $0xa1] sm:$0x1] }
   0xd   :  { %81 = vmatpush.bf16.msra.mxu1 %v63_v14  ;;  %184 = vperm.xlu0 %266, %v181_v12  }
   0xe   :  { %257 = vmatmul.msk.bf16.vlgmr.msra.gmra.mxu2 %vm27_vm0, %v110_v35 }
   0xf   :  { %170 = vmatpush.bf16.msrb.mxu2 %v158_v60 }
  0x10   :  { %139 = vmatpush.bf16.msra.mxu3 %v104_v41 }
  0x13   :  { %171 = vmatpush.bf16.msrb.mxu2 %v157_v63 }
  0x17   :  { %254 = vmatmul.msk.bf16.gmra.mxu0 %vm27_vm0, %v23_v8 }
  0x84   :  { %v43_v15 = vpop.f32.mrf.mxu0 }
  0x85   :  { %v44_v17 = vadd.f32 %v267_v16, %v43_v15  ;;  %v270_v15 = vld [vmem:[%s422_s2 + $0x98] ss:$0 sm:$0xff] }
  0x87   :  { %v53_v20 = vmax.f32 %v44_v17, 0.0 }
  0x8c   :  { %v45_v18 = vpop.f32.mrf.mxu0 }
  0x8d   :  { %v46_v19 = vadd.f32 %v267_v16, %v45_v18 }
  0x8f   :  { %v54_v21 = vmax.f32 %v46_v19, 0.0 }
  0x91   :  { %v61_v22 = vpack.c.bf16 %v54_v21, %v53_v20  ;;  %v124_v0 = vpop.f32.mrf.mxu2  ;;  %v180_v21 = vld [vmem:[%s422_s2 + $0xa0] sm:$0x1] }
  0x93   :  { %255 = vmatmul.msk.bf16.vlgmr.msra.gmra.mxu1 %vm67_vm1, %v61_v22  ;;  %v185_v22 = vpop.permute.xlu0 %184 }
  0x94   :  { %v48_v23 = vpop.f32.mrf.mxu0 }
  0x95   :  { %v49_v24 = vadd.f32 %v267_v16, %v48_v23 }
  0x97   :  { %v55_v27 = vmax.f32 %v49_v24, 0.0 }
  0x99   :  { %v126_v4 = vpop.f32.mrf.mxu2 }
  0x9c   :  { %v50_v25 = vpop.f32.mrf.mxu0 }
  0x9d   :  { %v51_v26 = vadd.f32 %v267_v16, %v50_v25 }
  0x9f   :  { %v56_v28 = vmax.f32 %v51_v26, 0.0 }
  0xa1   :  { %v62_v29 = vpack.c.bf16 %v56_v28, %v55_v27 }
  0xa3   :  { %256 = vmatmul.msk.bf16.gmra.mxu1 %vm67_vm1, %v62_v29 }
 0x110   :  { %v83_v42 = vpop.f32.mrf.mxu1 }
 0x111   :  { %v84_v47 = vadd.f32 %v268_v45, %v83_v42 }
 0x113   :  { %v93_v52 = vmax.f32 %v84_v47, 0.0 }
 0x118   :  { %v85_v43 = vpop.f32.mrf.mxu1 }
 0x119   :  { %v86_v48 = vadd.f32 %v268_v45, %v85_v43 }
 0x11b   :  { %v94_v53 = vmax.f32 %v86_v48, 0.0 }
 0x120   :  { %v88_v44 = vpop.f32.mrf.mxu1 }
 0x121   :  { %v89_v46 = vadd.f32 %v268_v45, %v88_v44 }
 0x123   :  { %v95_v50 = vmax.f32 %v89_v46, 0.0 }
 0x125   :  { %v97_v55 = vsub.f32 %v93_v52, %v95_v50 }
 0x128   :  { %v90_v49 = vpop.f32.mrf.mxu1 }
 0x129   :  { %v91_v51 = vadd.f32 %v268_v45, %v90_v49 }
 0x12b   :  { %v96_v54 = vmax.f32 %v91_v51, 0.0 }
 0x12d   :  { %v98_v56 = vsub.f32 %v94_v53, %v96_v54 }
 0x12f   :  { %v103_v57 = vpack.c.bf16 %v98_v56, %v97_v55 }
 0x131   :  { %258 = vmatmul.msk.bf16.vlgmr.msra.gmra.mxu3 %vm67_vm1, %v103_v57 }
 0x1b4   :  { %v141_v1 = vpop.f32.mrf.mxu3 }
 0x1b5   :  { %v142_v2 = vadd.f32 %v141_v1, %v124_v0 }
 0x1b7   :  { %v148_v6 = vadd.f32 %v269_v3, %v142_v2 }
 0x1b9   :  { %v150_v9 = vmax.f32 %v148_v6, 0.0 }
 0x1bc   :  { %v143_v5 = vpop.f32.mrf.mxu3 }
 0x1bd   :  { %v144_v7 = vadd.f32 %v143_v5, %v126_v4 }
 0x1bf   :  { %v149_v8 = vadd.f32 %v269_v3, %v144_v7 }
 0x1c1   :  { %v151_v10 = vmax.f32 %v149_v8, 0.0 }
 0x1c3   :  { %v156_v11 = vpack.c.bf16 %v151_v10, %v150_v9 }
 0x1c5   :  { %259 = vmatmul.msk.bf16.vlgmr.msrb.gmra.mxu2 %vm67_vm1, %v156_v11 }
 0x248   :  { %v173_v14 = vpop.f32.mrf.mxu2 }
 0x249   :  { %v174_v18 = vadd.f32 %v270_v15, %v173_v14 }
 0x24b   :  { %v178_v20 = vmax.f32 %v174_v18, 0.0 }
 0x250   :  { %v175_v16 = vpop.f32.mrf.mxu2 }
 0x251   :  { %v176_v17 = vadd.f32 %v270_v15, %v175_v16 }
 0x253   :  { %v179_v19 = vmax.f32 %v176_v17, 0.0 }
 0x255   :  { %260 = vmatpush.xpose.msk.msrb.mxu3 %vm67_vm1, %v179_v19 }
 0x259   :  { %261 = vmatpush.xpose.msk.msrb.mxu3 %vm67_vm1, %v178_v20 }
 0x25c   :  { %262 = vmatmul.msk.f32.vlgmr.msrb.gmra.mxu3 %vm67_vm1, %v180_v21 }
 0x2df   :  { %v213_v23 = vpop.f32.mrf.mxu3 }
 0x2e0   :  { %v214_v24 = vadd.f32 %v213_v23, %v185_v22 }
 0x2e2   :  { %v263_v25 = vmul.f32 -1.442695, %v214_v24 }
 0x2e4   :  { %271 = vpow2.f32 %v263_v25 }
 0x2ea   :  { %v272_v26 = vpop.eup %271 }
 0x2eb   :  { %v219_v27 = vadd.f32 1.0, %v272_v26 }
 0x2ed   :  { %273 = vrcp.f32 %v219_v27  ;;  %v231_v31 = vand.u32 2147483648, %v219_v27  ;;  %v229_v33 = vand.u32 2147483647, %v219_v27  ;;  %vm225_vm3 = vweird.f32 %v219_v27 }
 0x2ef   :  { %v232_v35 = vor.u32 1.1754944e-38, %v231_v31  ;;  %vm230_vm6 = vcmp.eq.f32.partialorder %v229_v33, 8.507059e+37 }
 0x2f3   :  { %v274_v28 = vpop.eup %273 }
 0x2f4   :  { %v221_v29 = vmul.f32 %v274_v28, %v219_v27  ;;  %vm226_vm2 = vweird.f32 %v274_v28 }
 0x2f5   :  { %vm227_vm4 = vmor %vm225_vm3, %vm226_vm2 }
 0x2f6   :  { %v222_v30 = vsub.f32 1.0, %v221_v29 }
 0x2f8   :  { %v223_v32 = vmul.f32 %v274_v28, %v222_v30 }
 0x2fa   :  { %v224_v34 = vadd.f32 %v274_v28, %v223_v32 }
 0x2fc   :  { %v228_v36 = vsel %vm227_vm4, %v274_v28, %v224_v34 }
 0x2fd   :  { %v233_v37 = vsel %vm230_vm6, %v232_v35, %v228_v36 }
 0x2fe   :  { %236 = vst.msk [vmem:[#allocation2] sm:$0x1] %vm235_vm5, %v233_v37 }
 0x2ff   :  { %247 = dma.vmem_to_hbm [thread:$0]  %s243_s12, 16, %s245_s14, [#allocation3]  }
 0x300   :  { %299 = dma.done.wait [#allocation3], 16  }
 0x301   :  { %300 = vsyncadd [#allocation3], 4294967280 }
 0x302   :  { %252 = vsyncpa [#allocation3], 1 }

</bundles_post_ra>
